<compile_context>
chip_gen: v5e
topology: v5e:2x2
jax: 0.10.0
libtpu: 0.0.40
codegen_flags: <defaults>
</compile_context>

<pallas_src>
import jax
import jax.numpy as jnp
from jax.experimental import pallas as pl
from jax.experimental.pallas import tpu as pltpu


# ---------------------------------------------------------------------------
# Pallas kernel factory
# ---------------------------------------------------------------------------
def _make_stats_kernel(num_pixels, block_lanes):
    """Fused softmax + weighted dice/CE statistics kernel.

    Per grid step (b, j):
      logits_ref, y_ref : (1, C, L)  classes on sublanes, pixels on lanes
      w_ref             : (1, 1, L)  pixel weights
      tp/fn/fp/tn/ce    : (1, C, 1)  per-batch accumulators (VMEM resident
                                     across the pixel-chunk axis j)
    """
    needs_mask = (num_pixels % block_lanes) != 0

    def kernel(logits_ref, y_ref, w_ref, tp_ref, fn_ref, fp_ref, tn_ref, ce_ref):
        j = pl.program_id(1)

        @pl.when(j == 0)
        def _init():
            tp_ref[...] = jnp.zeros_like(tp_ref)
            fn_ref[...] = jnp.zeros_like(fn_ref)
            fp_ref[...] = jnp.zeros_like(fp_ref)
            tn_ref[...] = jnp.zeros_like(tn_ref)
            ce_ref[...] = jnp.zeros_like(ce_ref)

        x = logits_ref[0].astype(jnp.float32)   # (C, L) raw logits
        y = y_ref[0].astype(jnp.float32)        # (C, L) soft labels
        w = w_ref[0].astype(jnp.float32)        # (1, L) pixel weight

        if needs_mask:
            # Mask out-of-range lanes of the last (partial) chunk in-kernel
            # instead of padding the tensors in HBM.
            lane = jax.lax.broadcasted_iota(jnp.int32, x.shape, 1)
            valid = lane + j * block_lanes < num_pixels
            x = jnp.where(valid, x, 0.0)
            y = jnp.where(valid, y, 0.0)
            w = jnp.where(valid[:1, :], w, 0.0)

        # Numerically stable softmax over the class (sublane) axis.
        m = jnp.max(x, axis=0, keepdims=True)               # (1, L)
        e = jnp.exp(x - m)                                   # (C, L)  EUP
        s = jnp.sum(e, axis=0, keepdims=True)                # (1, L)
        p = e * pl.reciprocal(s, approx=False)               # (C, L)  EUP divide
        logp = (x - m) - jnp.log(s)                          # (C, L)

        wy = y * w                                           # (C, L)
        wp = p * w                                           # (C, L)

        tp = jnp.sum(p * wy, axis=1, keepdims=True)          # (C, 1)
        sy = jnp.sum(wy, axis=1, keepdims=True)              # (C, 1) = tp + fn
        sp = jnp.sum(wp, axis=1, keepdims=True)              # (C, 1) = tp + fp
        ce = jnp.sum(wy * (-logp), axis=1, keepdims=True)    # (C, 1)
        ws = jnp.sum(w, axis=1, keepdims=True)               # (1, 1)

        tp_ref[...] += tp[None]
        fn_ref[...] += (sy - tp)[None]
        fp_ref[...] += (sp - tp)[None]
        tn_ref[...] += (ws - sy - sp + tp)[None]
        ce_ref[...] += ce[None]

    return kernel


def _dice_ce_stats(logits, soft_y, pix_w, *, block_lanes=None):
    """Per-batch, per-class weighted statistics.

    Returns (tp, fn, fp, tn, ce), each (B, C, 1) f32, summed over pixels with
    weight `pix_w`.  image_weight is NOT applied here; it is folded in later
    (all statistics are linear in the weight and accumulators are per-batch).
    """
    B, C, S = logits.shape

    if block_lanes is None:
        # ~2 MiB of f32 per big input block; lane count a multiple of 128.
        target_elems = 512 * 1024
        block_lanes = max(128, min(32768, (target_elems // max(C, 1)) // 128 * 128))

    if S <= block_lanes:
        lanes = S            # single full-extent block, no masking needed
    else:
        lanes = block_lanes  # multiple of 128; last partial chunk masked in-kernel
    n_chunks = pl.cdiv(S, lanes)

    kernel = _make_stats_kernel(S, lanes)
    stat_shape = jax.ShapeDtypeStruct((B, C, 1), jnp.float32)
    stat_spec = pl.BlockSpec((1, C, 1), lambda b, j: (b, 0, 0))

    return pl.pallas_call(
        kernel,
        out_shape=(stat_shape,) * 5,
        grid_spec=pltpu.PrefetchScalarGridSpec(
            num_scalar_prefetch=0,
            grid=(B, n_chunks),
            in_specs=[
                pl.BlockSpec((1, C, lanes), lambda b, j: (b, 0, j)),
                pl.BlockSpec((1, C, lanes), lambda b, j: (b, 0, j)),
                pl.BlockSpec((1, 1, lanes), lambda b, j: (b, 0, j)),
            ],
            out_specs=(stat_spec,) * 5,
        ),
        compiler_params=pltpu.CompilerParams(
            dimension_semantics=("parallel", "arbitrary"),
        ),
    )(logits, soft_y, pix_w)


# ---------------------------------------------------------------------------
# Module-equivalent wrapper
# ---------------------------------------------------------------------------
def dice_with_cross_entropy_loss(loss_input_dict, params, *, block_lanes=None):
    """Forward of DiceWithCrossEntropyLoss: dice_loss + ce_weight * ce_loss."""
    predict = loss_input_dict["prediction"]
    soft_y = loss_input_dict["ground_truth"]
    img_w = loss_input_dict["image_weight"]
    pix_w = loss_input_dict["pixel_weight"]
    cls_w = loss_input_dict["class_weight"]
    softmax = loss_input_dict["softmax"]
    if isinstance(predict, (list, tuple)):
        predict = predict[0]
    assert softmax, "kernel fuses the softmax; only softmax=True is supported"
    assert predict.ndim >= 3, "expect (B, C, spatial...) inputs"

    ce_weight = params["dicewithcrossentropyloss_ce_weight"]

    B, C = predict.shape[0], predict.shape[1]
    spatial = 1
    for d in predict.shape[2:]:
        spatial *= d

    # Free reshapes (no transpose, no cast): NCHW / NCDHW store the spatial
    # dims contiguously per class.  Native dtypes kept; kernel upcasts to f32.
    logits = predict.reshape(B, C, spatial)
    y = soft_y.reshape(B, C, spatial)
    w = pix_w.reshape(B, 1, spatial)

    tp_b, fn_b, fp_b, tn_b, ce_b = _dice_ce_stats(
        logits, y, w, block_lanes=block_lanes)

    # Fold the per-image weight in now (statistics are linear in the weight),
    # then reduce over the batch axis.
    scale = img_w.astype(jnp.float32).reshape(B, 1, 1)
    tp = jnp.sum(tp_b * scale, axis=(0, 2))
    fn = jnp.sum(fn_b * scale, axis=(0, 2))
    fp = jnp.sum(fp_b * scale, axis=(0, 2))
    tn = jnp.sum(tn_b * scale, axis=(0, 2))
    ce_c = jnp.sum(ce_b * scale, axis=(0, 2))
    w_sum = (tp + fn + fp + tn)[0]        # == total pixel*image weight

    cls_w = cls_w.astype(jnp.float32)

    # DiceLoss part.
    dice = (2.0 * tp + 1e-10) / (2.0 * tp + fn + fp + 1e-10)
    average_dice = jnp.sum(dice * cls_w) / jnp.sum(cls_w)
    dice_loss = 1.0 - average_dice

    # TODO(synk): CrossEntropyLoss source not given; implemented with PyMIC
    # semantics (class-weighted per-pixel CE, pixel-weighted mean).
    ce_loss = jnp.sum(ce_c * cls_w) / w_sum

    return dice_loss + ce_weight * ce_loss


# ---------------------------------------------------------------------------
# Pure-JAX reference (correctness check only)
# ---------------------------------------------------------------------------
def _reference(loss_input_dict, params):
    predict = loss_input_dict["prediction"].astype(jnp.float32)
    soft_y = loss_input_dict["ground_truth"].astype(jnp.float32)
    img_w = loss_input_dict["image_weight"].astype(jnp.float32)
    pix_w = loss_input_dict["pixel_weight"].astype(jnp.float32)
    cls_w = loss_input_dict["class_weight"].astype(jnp.float32)
    ce_weight = params["dicewithcrossentropyloss_ce_weight"]

    p = jax.nn.softmax(predict, axis=1)
    to2d = lambda x: jnp.transpose(x, (0, 2, 3, 1)).reshape(-1, x.shape[1])
    p2, y2 = to2d(p), to2d(soft_y)
    w2 = to2d(pix_w * img_w[:, None, None, None])

    tp = jnp.sum(p2 * y2 * w2, axis=0)
    fn = jnp.sum((1 - p2) * y2 * w2, axis=0)
    fp = jnp.sum(p2 * (1 - y2) * w2, axis=0)
    dice = (2 * tp + 1e-10) / (2 * tp + fn + fp + 1e-10)
    dice_loss = 1.0 - jnp.sum(dice * cls_w) / jnp.sum(cls_w)

    ce = -y2 * jnp.log(p2)
    ce = jnp.sum(ce * cls_w, axis=1)
    ce_loss = jnp.sum(ce * w2[:, 0]) / jnp.sum(w2)
    return dice_loss + ce_weight * ce_loss


if __name__ == "__main__":
    def make_inputs(key, B, C, H, W):
        k1, k2, k3, k4 = jax.random.split(key, 4)
        prediction = jax.random.normal(k1, (B, C, H, W), dtype=jnp.float32)
        labels = jax.random.randint(k2, (B, H, W), 0, C)
        ground_truth = jnp.moveaxis(jax.nn.one_hot(labels, C, dtype=jnp.float32), -1, 1)
        pixel_weight = jax.random.uniform(k3, (B, 1, H, W), minval=0.5, maxval=1.5)
        image_weight = jax.random.uniform(k4, (B,), minval=0.5, maxval=1.5)
        class_weight = jnp.arange(1.0, C + 1.0, dtype=jnp.float32)
        return {
            "prediction": prediction,
            "ground_truth": ground_truth,
            "image_weight": image_weight,
            "pixel_weight": pixel_weight,
            "class_weight": class_weight,
            "softmax": True,
        }

    params = {
        "dicewithcrossentropyloss_enable_pixel_weight": True,
        "dicewithcrossentropyloss_enable_class_weight": True,
        "dicewithcrossentropyloss_ce_weight": 1.0,
    }

    key = jax.random.PRNGKey(0)
    k_a, k_b = jax.random.split(key)

    # 1) Main check: B=2, C=4, 16x16 spatial -> single full-extent pixel block.
    inputs = make_inputs(k_a, 2, 4, 16, 16)
    loss = jax.block_until_ready(dice_with_cross_entropy_loss(inputs, params))
    ref = jax.block_until_ready(_reference(inputs, params))
    assert jnp.allclose(loss, ref, rtol=1e-5, atol=1e-5), (loss, ref)

    # 2) Masking path: 13*13 = 169 pixels with a forced 128-lane chunk, so the
    #    second chunk is partial and masked in-kernel.
    inputs2 = make_inputs(k_b, 2, 3, 13, 13)
    loss2 = jax.block_until_ready(
        dice_with_cross_entropy_loss(inputs2, params, block_lanes=128))
    ref2 = jax.block_until_ready(_reference(inputs2, params))
    assert jnp.allclose(loss2, ref2, rtol=1e-5, atol=1e-5), (loss2, ref2)

    print("KERNEL_OK")
</pallas_src>

<mosaic_0001>
module attributes {stable_mosaic.version = 11 : i64} {
  func.func @kernel(%arg0: i32, %arg1: i32, %arg2: memref<1x4x256xf32, #tpu.memory_space<vmem>>, %arg3: memref<1x4x256xf32, #tpu.memory_space<vmem>>, %arg4: memref<1x1x256xf32, #tpu.memory_space<vmem>>, %arg5: memref<1x4x1xf32, #tpu.memory_space<vmem>>, %arg6: memref<1x4x1xf32, #tpu.memory_space<vmem>>, %arg7: memref<1x4x1xf32, #tpu.memory_space<vmem>>, %arg8: memref<1x4x1xf32, #tpu.memory_space<vmem>>, %arg9: memref<1x4x1xf32, #tpu.memory_space<vmem>>) attributes {dimension_semantics = [#tpu.dimension_semantics<parallel>, #tpu.dimension_semantics<arbitrary>], iteration_bounds = array<i64: 2, 1>, scalar_prefetch = 0 : i64, scratch_operands = 0 : i64, tpu.core_type = #tpu.core_type<tc>, window_params = [{transform_indices = @transform_0, window_bounds = array<i64: 1, 4, 256>}, {transform_indices = @transform_1, window_bounds = array<i64: 1, 4, 256>}, {transform_indices = @transform_2, window_bounds = array<i64: 1, 1, 256>}, {transform_indices = @transform_3, window_bounds = array<i64: 1, 4, 1>}, {transform_indices = @transform_4, window_bounds = array<i64: 1, 4, 1>}, {transform_indices = @transform_5, window_bounds = array<i64: 1, 4, 1>}, {transform_indices = @transform_6, window_bounds = array<i64: 1, 4, 1>}, {transform_indices = @transform_7, window_bounds = array<i64: 1, 4, 1>}]} {
    %c0_i32 = arith.constant 0 : i32
    %0 = arith.cmpi eq, %arg1, %c0_i32 : i32
    %1 = arith.extui %0 : i1 to i32
    %c0_i32_0 = arith.constant 0 : i32
    %2 = arith.cmpi ne, %1, %c0_i32_0 : i32
    scf.if %2 {
      %cst_46 = arith.constant 0.000000e+00 : f32
      %68 = vector.broadcast %cst_46 : f32 to vector<1x4x1xf32>
      %c0_47 = arith.constant 0 : index
      %c0_48 = arith.constant 0 : index
      %c0_49 = arith.constant 0 : index
      %69 = vector.load %arg5[%c0_47, %c0_48, %c0_49] : memref<1x4x1xf32, #tpu.memory_space<vmem>>, vector<1x4x1xf32>
      tpu.vector_store %arg5[%c0_47, %c0_48, %c0_49], %68 {strides = array<i32>} : memref<1x4x1xf32, #tpu.memory_space<vmem>>, vector<1x4x1xf32>,
      %cst_50 = arith.constant 0.000000e+00 : f32
      %70 = vector.broadcast %cst_50 : f32 to vector<1x4x1xf32>
      %c0_51 = arith.constant 0 : index
      %c0_52 = arith.constant 0 : index
      %c0_53 = arith.constant 0 : index
      %71 = vector.load %arg6[%c0_51, %c0_52, %c0_53] : memref<1x4x1xf32, #tpu.memory_space<vmem>>, vector<1x4x1xf32>
      tpu.vector_store %arg6[%c0_51, %c0_52, %c0_53], %70 {strides = array<i32>} : memref<1x4x1xf32, #tpu.memory_space<vmem>>, vector<1x4x1xf32>,
      %cst_54 = arith.constant 0.000000e+00 : f32
      %72 = vector.broadcast %cst_54 : f32 to vector<1x4x1xf32>
      %c0_55 = arith.constant 0 : index
      %c0_56 = arith.constant 0 : index
      %c0_57 = arith.constant 0 : index
      %73 = vector.load %arg7[%c0_55, %c0_56, %c0_57] : memref<1x4x1xf32, #tpu.memory_space<vmem>>, vector<1x4x1xf32>
      tpu.vector_store %arg7[%c0_55, %c0_56, %c0_57], %72 {strides = array<i32>} : memref<1x4x1xf32, #tpu.memory_space<vmem>>, vector<1x4x1xf32>,
      %cst_58 = arith.constant 0.000000e+00 : f32
      %74 = vector.broadcast %cst_58 : f32 to vector<1x4x1xf32>
      %c0_59 = arith.constant 0 : index
      %c0_60 = arith.constant 0 : index
      %c0_61 = arith.constant 0 : index
      %75 = vector.load %arg8[%c0_59, %c0_60, %c0_61] : memref<1x4x1xf32, #tpu.memory_space<vmem>>, vector<1x4x1xf32>
      tpu.vector_store %arg8[%c0_59, %c0_60, %c0_61], %74 {strides = array<i32>} : memref<1x4x1xf32, #tpu.memory_space<vmem>>, vector<1x4x1xf32>,
      %cst_62 = arith.constant 0.000000e+00 : f32
      %76 = vector.broadcast %cst_62 : f32 to vector<1x4x1xf32>
      %c0_63 = arith.constant 0 : index
      %c0_64 = arith.constant 0 : index
      %c0_65 = arith.constant 0 : index
      %77 = vector.load %arg9[%c0_63, %c0_64, %c0_65] : memref<1x4x1xf32, #tpu.memory_space<vmem>>, vector<1x4x1xf32>
      tpu.vector_store %arg9[%c0_63, %c0_64, %c0_65], %76 {strides = array<i32>} : memref<1x4x1xf32, #tpu.memory_space<vmem>>, vector<1x4x1xf32>,
    } else {
    }
    %c0 = arith.constant 0 : index
    %c0_1 = arith.constant 0 : index
    %c0_2 = arith.constant 0 : index
    %3 = vector.load %arg2[%c0, %c0_1, %c0_2] : memref<1x4x256xf32, #tpu.memory_space<vmem>>, vector<1x4x256xf32>
    %4 = vector.shape_cast %3 : vector<1x4x256xf32> to vector<4x256xf32>
    %c0_3 = arith.constant 0 : index
    %c0_4 = arith.constant 0 : index
    %c0_5 = arith.constant 0 : index
    %5 = vector.load %arg3[%c0_3, %c0_4, %c0_5] : memref<1x4x256xf32, #tpu.memory_space<vmem>>, vector<1x4x256xf32>
    %6 = vector.shape_cast %5 : vector<1x4x256xf32> to vector<4x256xf32>
    %c0_6 = arith.constant 0 : index
    %c0_7 = arith.constant 0 : index
    %c0_8 = arith.constant 0 : index
    %7 = vector.load %arg4[%c0_6, %c0_7, %c0_8] : memref<1x1x256xf32, #tpu.memory_space<vmem>>, vector<1x1x256xf32>
    %8 = vector.shape_cast %7 : vector<1x1x256xf32> to vector<1x256xf32>
    %cst = arith.constant dense<0xFF800000> : vector<256xf32>
    %9 = vector.multi_reduction <maximumf>, %4, %cst [0] : vector<4x256xf32> to vector<256xf32>
    %10 = vector.shape_cast %9 : vector<256xf32> to vector<1x256xf32>
    %11 = vector.broadcast %10 : vector<1x256xf32> to vector<4x256xf32>
    %12 = arith.subf %4, %11 : vector<4x256xf32>
    %13 = math.exp %12 : vector<4x256xf32>
    %cst_9 = arith.constant dense<0.000000e+00> : vector<256xf32>
    %14 = vector.multi_reduction <add>, %13, %cst_9 [0] : vector<4x256xf32> to vector<256xf32>
    %15 = vector.shape_cast %14 : vector<256xf32> to vector<1x256xf32>
    %16 = tpu.reciprocal %15 : vector<1x256xf32> -> vector<1x256xf32>
    %17 = vector.broadcast %16 : vector<1x256xf32> to vector<4x256xf32>
    %18 = arith.mulf %13, %17 : vector<4x256xf32>
    %19 = vector.broadcast %10 : vector<1x256xf32> to vector<4x256xf32>
    %20 = arith.subf %4, %19 : vector<4x256xf32>
    %21 = math.log %15 : vector<1x256xf32>
    %22 = vector.broadcast %21 : vector<1x256xf32> to vector<4x256xf32>
    %23 = arith.subf %20, %22 : vector<4x256xf32>
    %24 = vector.broadcast %8 : vector<1x256xf32> to vector<4x256xf32>
    %25 = arith.mulf %6, %24 : vector<4x256xf32>
    %26 = vector.broadcast %8 : vector<1x256xf32> to vector<4x256xf32>
    %27 = arith.mulf %18, %26 : vector<4x256xf32>
    %28 = arith.mulf %18, %25 : vector<4x256xf32>
    %cst_10 = arith.constant dense<0.000000e+00> : vector<4xf32>
    %29 = vector.multi_reduction <add>, %28, %cst_10 [1] : vector<4x256xf32> to vector<4xf32>
    %30 = vector.shape_cast %29 : vector<4xf32> to vector<4x1xf32>
    %cst_11 = arith.constant dense<0.000000e+00> : vector<4xf32>
    %31 = vector.multi_reduction <add>, %25, %cst_11 [1] : vector<4x256xf32> to vector<4xf32>
    %32 = vector.shape_cast %31 : vector<4xf32> to vector<4x1xf32>
    %cst_12 = arith.constant dense<0.000000e+00> : vector<4xf32>
    %33 = vector.multi_reduction <add>, %27, %cst_12 [1] : vector<4x256xf32> to vector<4xf32>
    %34 = vector.shape_cast %33 : vector<4xf32> to vector<4x1xf32>
    %cst_13 = arith.constant 0.000000e+00 : f32
    %35 = vector.broadcast %cst_13 : f32 to vector<4x256xf32>
    %36 = arith.subf %35, %23 : vector<4x256xf32>
    %37 = arith.mulf %25, %36 : vector<4x256xf32>
    %cst_14 = arith.constant dense<0.000000e+00> : vector<4xf32>
    %38 = vector.multi_reduction <add>, %37, %cst_14 [1] : vector<4x256xf32> to vector<4xf32>
    %39 = vector.shape_cast %38 : vector<4xf32> to vector<4x1xf32>
    %cst_15 = arith.constant dense<0.000000e+00> : vector<1xf32>
    %40 = vector.multi_reduction <add>, %8, %cst_15 [1] : vector<1x256xf32> to vector<1xf32>
    %41 = vector.shape_cast %40 : vector<1xf32> to vector<1x1xf32>
    %c0_16 = arith.constant 0 : index
    %c0_17 = arith.constant 0 : index
    %c0_18 = arith.constant 0 : index
    %42 = vector.load %arg5[%c0_16, %c0_17, %c0_18] : memref<1x4x1xf32, #tpu.memory_space<vmem>>, vector<1x4x1xf32>
    %43 = vector.shape_cast %30 : vector<4x1xf32> to vector<1x4x1xf32>
    %44 = arith.addf %42, %43 : vector<1x4x1xf32>
    %c0_19 = arith.constant 0 : index
    %c0_20 = arith.constant 0 : index
    %c0_21 = arith.constant 0 : index
    %45 = vector.load %arg5[%c0_19, %c0_20, %c0_21] : memref<1x4x1xf32, #tpu.memory_space<vmem>>, vector<1x4x1xf32>
    tpu.vector_store %arg5[%c0_19, %c0_20, %c0_21], %44 {strides = array<i32>} : memref<1x4x1xf32, #tpu.memory_space<vmem>>, vector<1x4x1xf32>,
    %c0_22 = arith.constant 0 : index
    %c0_23 = arith.constant 0 : index
    %c0_24 = arith.constant 0 : index
    %46 = vector.load %arg6[%c0_22, %c0_23, %c0_24] : memref<1x4x1xf32, #tpu.memory_space<vmem>>, vector<1x4x1xf32>
    %47 = arith.subf %32, %30 : vector<4x1xf32>
    %48 = vector.shape_cast %47 : vector<4x1xf32> to vector<1x4x1xf32>
    %49 = arith.addf %46, %48 : vector<1x4x1xf32>
    %c0_25 = arith.constant 0 : index
    %c0_26 = arith.constant 0 : index
    %c0_27 = arith.constant 0 : index
    %50 = vector.load %arg6[%c0_25, %c0_26, %c0_27] : memref<1x4x1xf32, #tpu.memory_space<vmem>>, vector<1x4x1xf32>
    tpu.vector_store %arg6[%c0_25, %c0_26, %c0_27], %49 {strides = array<i32>} : memref<1x4x1xf32, #tpu.memory_space<vmem>>, vector<1x4x1xf32>,
    %c0_28 = arith.constant 0 : index
    %c0_29 = arith.constant 0 : index
    %c0_30 = arith.constant 0 : index
    %51 = vector.load %arg7[%c0_28, %c0_29, %c0_30] : memref<1x4x1xf32, #tpu.memory_space<vmem>>, vector<1x4x1xf32>
    %52 = arith.subf %34, %30 : vector<4x1xf32>
    %53 = vector.shape_cast %52 : vector<4x1xf32> to vector<1x4x1xf32>
    %54 = arith.addf %51, %53 : vector<1x4x1xf32>
    %c0_31 = arith.constant 0 : index
    %c0_32 = arith.constant 0 : index
    %c0_33 = arith.constant 0 : index
    %55 = vector.load %arg7[%c0_31, %c0_32, %c0_33] : memref<1x4x1xf32, #tpu.memory_space<vmem>>, vector<1x4x1xf32>
    tpu.vector_store %arg7[%c0_31, %c0_32, %c0_33], %54 {strides = array<i32>} : memref<1x4x1xf32, #tpu.memory_space<vmem>>, vector<1x4x1xf32>,
    %c0_34 = arith.constant 0 : index
    %c0_35 = arith.constant 0 : index
    %c0_36 = arith.constant 0 : index
    %56 = vector.load %arg8[%c0_34, %c0_35, %c0_36] : memref<1x4x1xf32, #tpu.memory_space<vmem>>, vector<1x4x1xf32>
    %57 = vector.broadcast %41 : vector<1x1xf32> to vector<4x1xf32>
    %58 = arith.subf %57, %32 : vector<4x1xf32>
    %59 = arith.subf %58, %34 : vector<4x1xf32>
    %60 = arith.addf %59, %30 : vector<4x1xf32>
    %61 = vector.shape_cast %60 : vector<4x1xf32> to vector<1x4x1xf32>
    %62 = arith.addf %56, %61 : vector<1x4x1xf32>
    %c0_37 = arith.constant 0 : index
    %c0_38 = arith.constant 0 : index
    %c0_39 = arith.constant 0 : index
    %63 = vector.load %arg8[%c0_37, %c0_38, %c0_39] : memref<1x4x1xf32, #tpu.memory_space<vmem>>, vector<1x4x1xf32>
    tpu.vector_store %arg8[%c0_37, %c0_38, %c0_39], %62 {strides = array<i32>} : memref<1x4x1xf32, #tpu.memory_space<vmem>>, vector<1x4x1xf32>,
    %c0_40 = arith.constant 0 : index
    %c0_41 = arith.constant 0 : index
    %c0_42 = arith.constant 0 : index
    %64 = vector.load %arg9[%c0_40, %c0_41, %c0_42] : memref<1x4x1xf32, #tpu.memory_space<vmem>>, vector<1x4x1xf32>
    %65 = vector.shape_cast %39 : vector<4x1xf32> to vector<1x4x1xf32>
    %66 = arith.addf %64, %65 : vector<1x4x1xf32>
    %c0_43 = arith.constant 0 : index
    %c0_44 = arith.constant 0 : index
    %c0_45 = arith.constant 0 : index
    %67 = vector.load %arg9[%c0_43, %c0_44, %c0_45] : memref<1x4x1xf32, #tpu.memory_space<vmem>>, vector<1x4x1xf32>
    tpu.vector_store %arg9[%c0_43, %c0_44, %c0_45], %66 {strides = array<i32>} : memref<1x4x1xf32, #tpu.memory_space<vmem>>, vector<1x4x1xf32>,
    return
  }
  func.func @transform_0(%arg0: i32, %arg1: i32) -> (i32, i32, i32) {
    %c0_i32 = arith.constant 0 : i32
    %c0_i32_0 = arith.constant 0 : i32
    return %arg0, %c0_i32, %arg1 : i32, i32, i32
  }
  func.func @transform_1(%arg0: i32, %arg1: i32) -> (i32, i32, i32) {
    %c0_i32 = arith.constant 0 : i32
    %c0_i32_0 = arith.constant 0 : i32
    return %arg0, %c0_i32, %arg1 : i32, i32, i32
  }
  func.func @transform_2(%arg0: i32, %arg1: i32) -> (i32, i32, i32) {
    %c0_i32 = arith.constant 0 : i32
    %c0_i32_0 = arith.constant 0 : i32
    return %arg0, %c0_i32, %arg1 : i32, i32, i32
  }
  func.func @transform_3(%arg0: i32, %arg1: i32) -> (i32, i32, i32) {
    %c0_i32 = arith.constant 0 : i32
    %c0_i32_0 = arith.constant 0 : i32
    %c0_i32_1 = arith.constant 0 : i32
    return %arg0, %c0_i32, %c0_i32_0 : i32, i32, i32
  }
  func.func @transform_4(%arg0: i32, %arg1: i32) -> (i32, i32, i32) {
    %c0_i32 = arith.constant 0 : i32
    %c0_i32_0 = arith.constant 0 : i32
    %c0_i32_1 = arith.constant 0 : i32
    return %arg0, %c0_i32, %c0_i32_0 : i32, i32, i32
  }
  func.func @transform_5(%arg0: i32, %arg1: i32) -> (i32, i32, i32) {
    %c0_i32 = arith.constant 0 : i32
    %c0_i32_0 = arith.constant 0 : i32
    %c0_i32_1 = arith.constant 0 : i32
    return %arg0, %c0_i32, %c0_i32_0 : i32, i32, i32
  }
  func.func @transform_6(%arg0: i32, %arg1: i32) -> (i32, i32, i32) {
    %c0_i32 = arith.constant 0 : i32
    %c0_i32_0 = arith.constant 0 : i32
    %c0_i32_1 = arith.constant 0 : i32
    return %arg0, %c0_i32, %c0_i32_0 : i32, i32, i32
  }
  func.func @transform_7(%arg0: i32, %arg1: i32) -> (i32, i32, i32) {
    %c0_i32 = arith.constant 0 : i32
    %c0_i32_0 = arith.constant 0 : i32
    %c0_i32_1 = arith.constant 0 : i32
    return %arg0, %c0_i32, %c0_i32_0 : i32, i32, i32
  }
}

</mosaic_0001>

<bundles_post_ra>
// kernel: tpu_custom_call.1
= control target key start
LH: loop header
LB: loop body
LE: loop exit
PB: predicated region body
PF: predicated region fallthrough
CT: control target
= control target key end

     0   :  { %s1354_s0 = inlined_call_operand.hbm [shape: f32[2,4,256], index: 0, kind: input, shape index: {}]   ;;  %s1355_s1 = inlined_call_operand.hbm [shape: f32[2,4,256], index: 1, kind: input, shape index: {}]   ;;  %s1356_s2 = inlined_call_operand.hbm [shape: f32[2,1,256], index: 2, kind: input, shape index: {}]   ;;  %s1357_s3 = inlined_call_operand.vmem [shape: f32[2,4,1], index: 3, kind: output, shape index: {0}]   ;;  %s1358_s4 = inlined_call_operand.vmem [shape: f32[2,4,1], index: 4, kind: output, shape index: {1}]   ;;  %s1359_s5 = inlined_call_operand.vmem [shape: f32[2,4,1], index: 5, kind: output, shape index: {2}]   ;;  %s1360_s6 = inlined_call_operand.vmem [shape: f32[2,4,1], index: 6, kind: output, shape index: {3}]   ;;  %s1361_s7 = inlined_call_operand.vmem [shape: f32[2,4,1], index: 7, kind: output, shape index: {4}]  }
   0x1   :  { %1365 = sst [smem:[#allocation12_spill]] %s1355_s1 }
   0x2   :  { %1366 = sst [smem:[#allocation13_spill]] %s1360_s6 }
   0x3   :  { %1367 = sst [smem:[#allocation14_spill]] %s1361_s7 }
   0x4   :  { %13 = vsyncpa [#allocation3], 0 }
   0x5   :  { %15 = vsyncpa [#allocation3 + $0x1], 0 }
   0x6   :  { %16 = vsyncpa [#allocation5], 0 }
   0x7   :  { %18 = vsyncpa [#allocation5 + $0x1], 0  ;;  %s1168_s24 = smov 0   ;;  %s1170_s25 = smov 0  }
   0x8   :  { %s1172_s26 = smov 0   ;;  %s1174_s27 = smov 0  }
   0x9   :  { %s1176_s28 = smov 0   ;;  %s1178_s29 = smov 0  }
   0xa LB: > { %1368 = sst [smem:[#allocation9_spill]] %s1113_s26  ;;  %s1362_s30 = sadd.s32 4294967295, %s1125_s29   ;;  %s1125_s29 = sphi %s1178_s29, %s24_s29   ;;  %s1121_s28 = sphi %s1176_s28, %s1387_s28   ;;  %s1117_s27 = sphi %s1174_s27, %s1386_s27   ;;  %s1113_s26 = sphi %s1172_s26, %s1385_s26   ;;  %s1109_s25 = sphi %s1170_s25, %s1384_s25   ;;  %s1105_s24 = sphi %s1168_s24, %s1383_s24  }
   0xb   : > { %s36_s8 = sadd.s32 1, %s1121_s28  ;;  %s45_s9 = sadd.s32 1, %s1113_s26 }
   0xc   : > { %p38_p0 = scmp.ge.s32.totalorder %s36_s8, 2  ;;  %p52_p1 = scmp.ne.s32.totalorder %s1113_s26, %s1109_s25 }
   0xd   : > { %p53_p2 = scmp.eq.s32.totalorder %s1125_s29, 0  ;;  %p58_p4 = scmp.ne.s32.totalorder %s1109_s25, %s1105_s24 }
   0xe   : > { %s1389_s8 = smov (%p38_p0, %s36_s8), 0  ;;  %p59_p5 = scmp.eq.s32.totalorder %s1362_s30, 0 }
   0xf   : > { %1369 = sst [smem:[#allocation10_spill]] %s1389_s8  ;;  %p54_p3 = por %p53_p2, %p52_p1 }
  0x10   : > { %s40_s10 = ssub.s32 %s1121_s28, %s1389_s8  ;;  %p1209_p7 = por %p59_p5, %p58_p4 }
  0x11   : > { %p43_p6 = scmp.eq.s32.totalorder %s40_s10, 0  ;;  %p921_p8 = scmp.lt.s32.totalorder %s1125_s29, 2 }
  0x12   : > { %s268_s13 = sand.u32 1, %s1113_s26   ;;  %s903_s14 = sshll.u32 %s1121_s28, 3 }
  0x13   : > { %s1215_s12 = scalar_select %p43_p6, %s1113_s26, %s45_s9  }
  0x14   : > { %s884_s15 = sshll.u32 %s268_s13, 3  ;;  %p1219_p9 = pnand %p921_p8, %p54_p3 }
  0x15   : > { %1371 = sst [smem:[#allocation11_spill]] %s1215_s12  ;;  %s290_s17 = sand.u32 1, %s1125_s29  }
  0x16   : > { %s1373_s1 = sld [smem:[#allocation12_spill]]  ;;  %s294_s21 = scalar_lea.vmem [#allocation4], %s884_s15 }
  0x17   : > { %s305_s22 = sshll.u32 %s294_s21, 4  ;;  %p892_p10 = scmp.ge.s32.totalorder %s1125_s29, 1  ;;  %s306_s22 = int_to_ptr.vmem [resolvable:$true] %s305_s22 }
  0x18   : > { %s291_s24 = scalar_lea.sflag [#allocation5], %s290_s17  ;;  %p331_p11 = scmp.lt.s32.totalorder %s1125_s29, 3 }
  0x19   : > { %s279_s18 = scalar_lea.hbm %s1354_s0, %s903_s14  ;;  %s272_s19 = scalar_lea.vmem [#allocation2], %s884_s15 }
  0x1a   : > { %p1231_p12 = pnand %p892_p10, %p331_p11  ;;  %s281_s21 = sshll.u32 %s279_s18, 4  ;;  %s282_s21 = int_to_ptr.hbm [resolvable:$true] %s281_s21 }
  0x1b   : > { %s269_s8 = scalar_lea.sflag [#allocation3], %s268_s13  ;;  %s891_s17 = sshll.u32 %s1121_s28, 1 }
  0x1c   : > { %s301_s20 = scalar_lea.hbm %s1373_s1, %s903_s14  ;;  %s890_s1 = sshll.u32 %s268_s13, 1 }
  0x1d   : > { %s303_s23 = sshll.u32 %s301_s20, 4  ;;  %s283_s20 = sshll.u32 %s272_s19, 4  ;;  %s304_s23 = int_to_ptr.hbm [resolvable:$true] %s303_s23  ;;  %s284_s20 = int_to_ptr.vmem [resolvable:$true] %s283_s20 }
  0x1e   : > { %917 = dma.hbm_to_vmem [thread:$0]  (!%p1219_p9), %s304_s23, 128, %s306_s22, %s291_s24  }
  0x1f   : > { %914 = dma.hbm_to_vmem [thread:$0]  (!%p1219_p9), %s282_s21, 128, %s284_s20, %s269_s8  }
  0x20   : > { %s322_s12 = scalar_lea.hbm %s1356_s2, %s891_s17  ;;  %s316_s26 = scalar_lea.vmem [#allocation6], %s890_s1 }
  0x21   : > { %s326_s7 = sshll.u32 %s316_s26, 4  ;;  %s324_s6 = sshll.u32 %s322_s12, 4  ;;  %s327_s7 = int_to_ptr.vmem [resolvable:$true] %s326_s7  ;;  %s325_s6 = int_to_ptr.hbm [resolvable:$true] %s324_s6 }
  0x22   : > { %920 = dma.hbm_to_vmem [thread:$0]  (!%p1219_p9), %s325_s6, 32, %s327_s7, %s291_s24  }
  0x23   : > { %335 = sbr.rel (%p1231_p12) target bundleno = 285 (0x11d), region = 32  ;;  %s337_s30 = sand.u32 (!%p1231_p12), 1, %s1109_s25  }
  0x24   : > { %s893_s13 = sshll.u32 (!%p1231_p12), %s337_s30, 3  ;;  %s338_s8 = scalar_lea.sflag (!%p1231_p12), [#allocation3], %s337_s30 }
  0x25   : > { %s341_s14 = scalar_lea.vmem (!%p1231_p12), [#allocation2], %s893_s13 }
  0x28   : > { %1096 = dma.done.wait (%p1209_p7), %s338_s8, 128  }
  0x29   : > { %1098 = vsyncadd (%p1209_p7), %s338_s8, 4294967168  ;;  %s1375_s1 = sadd.s32 4294967295, %s1125_s29   ;;  %s1255_s6 = scalar_lea.vmem [#allocation4], %s893_s13 }
  0x2a   : > { %s347_s26 = sand.u32 1, %s1375_s1  }
  0x2b   : > { %s348_s12 = scalar_lea.sflag [#allocation5], %s347_s26 }
  0x2c   : > { %1100 = dma.done.wait (%p1209_p7), %s348_s12, 160  }
  0x2d   : > { %1102 = vsyncadd (%p1209_p7), %s348_s12, 4294967136  ;;  %s895_s7 = sshll.u32 %s337_s30, 1  ;;  %vm604_vm0 = vcmask 1040384   ;;  %v451_v1 = vld [vmem:[%s341_s14] sm:$0xff]  ;;  %vm460_vm1 = vcmask 1043456   ;;  %p421_p13 = scmp.lt.s32.totalorder %s1117_s27, 1 }
  0x2e   : > { %s361_s15 = scalar_lea.vmem [#allocation6], %s895_s7  ;;  %455 = vst [vmem:[#allocation1] ss:$2 sm:$0xff] %v451_v1  ;;  %vm445_vm10 = vcmask 3072   ;;  %s1379_s14 = sld [smem:[#allocation14_spill]] }
  0x2f   : > { %v453_v0 = vld [vmem:[%s361_s15] sm:$0x3]  ;;  %s1391_s27 = smov (!%p421_p13, %s1117_s27), 1 }
  0x30   : > { %v548_v2 = vperm.slane %v453_v0, 0  ;;  %v549_v3 = vperm.slane %v453_v0, 1  ;;  %s896_s11 = sshll.u32 %s1391_s27, 2  ;;  %s1378_s27 = sld [smem:[#allocation13_spill]] }
  0x31   : > { %s424_s9 = scalar_lea.vmem %s1357_s3, %s896_s11  ;;  %s1302_s19 = scalar_lea.vmem %s1358_s4, %s896_s11 }
  0x32   : > { %v605_v4 = vsel %vm604_vm0, %v548_v2, 0.0  ;;  %v606_v5 = vsel %vm604_vm0, %v549_v3, 0.0  ;;  %v550_v28 = vrot.slane %v549_v3, 4  ;;  %v452_v3 = vld [vmem:[%s1255_s6] sm:$0xff]  ;;  %s1307_s17 = scalar_lea.vmem %s1359_s5, %s896_s11 }
  0x33   : > { %v607_v6 = vadd.f32 %v606_v5, %v605_v4 }
  0x34   : > { %v551_v35 = vsel %vm460_vm1, %v548_v2, %v550_v28  ;;  %s440_s1 = scalar_lea.vmem %s1379_s14, %s896_s11 }
  0x35   : > { %608 = vadd.xlane.f32.xlu0 %v607_v6  ;;  %v456_v7 = vld.sshfl [vmem:[#allocation1] sm:$0xff pattern:$0x75316420]  ;;  %v457_v8 = vld.sshfl [vmem:[#allocation1 + $0x8] sm:$0xff pattern:$0x75316420] }
  0x36   : > { %v461_v9 = vsel %vm460_vm1, %v456_v7, -inf  ;;  %v468_v10 = vsel %vm460_vm1, %v457_v8, -inf  ;;  %s1312_s30 = scalar_lea.vmem %s1378_s27, %s896_s11 }
  0x37   : > { %v462_v11 = vrot.slane %v461_v9, 4  ;;  %v469_v12 = vrot.slane %v468_v10, 4 }
  0x39   : > { %v463_v13 = vmax.f32 %v461_v9, %v462_v11  ;;  %v470_v14 = vmax.f32 %v468_v10, %v469_v12  ;;  %v553_v11 = vmul.f32 %v551_v35, %v452_v3 }
  0x3b   : > { %v464_v15 = vrot.slane %v463_v13, 2  ;;  %v471_v16 = vrot.slane %v470_v14, 2 }
  0x3d   : > { %v465_v17 = vmax.f32 %v463_v13, %v464_v15  ;;  %v472_v18 = vmax.f32 %v470_v14, %v471_v16 }
  0x3f   : > { %v466_v19 = vrot.slane %v465_v17, 1  ;;  %v473_v20 = vrot.slane %v472_v18, 1 }
  0x41   : > { %v467_v21 = vmax.f32 %v465_v17, %v466_v19  ;;  %v474_v22 = vmax.f32 %v472_v18, %v473_v20 }
  0x43   : > { %v477_v23 = vrot.slane %v474_v22, 4 }
  0x45   : > { %v478_v24 = vsel %vm460_vm1, %v467_v21, %v477_v23 }
  0x46   : > { %v1264_v25 = vsub.f32 %v451_v1, %v478_v24 }
  0x48   : > { %v481_v26 = vmul.f32 1.442695, %v1264_v25 }
  0x4a   : > { %971 = vpow2.f32 %v481_v26 }
  0x50   : > { %v1267_v27 = vpop.eup %971 }
  0x51   : > { %484 = vst [vmem:[#allocation1] ss:$2 sm:$0xff] %v1267_v27 }
  0x58   : > { %v485_v29 = vld.sshfl [vmem:[#allocation1] sm:$0xff pattern:$0x75316420]  ;;  %v486_v30 = vld.sshfl [vmem:[#allocation1 + $0x8] sm:$0xff pattern:$0x75316420] }
  0x59   : > { %v489_v31 = vsel %vm460_vm1, %v485_v29, 0.0  ;;  %v496_v32 = vsel %vm460_vm1, %v486_v30, 0.0 }
  0x5a   : > { %v490_v33 = vrot.slane %v489_v31, 4  ;;  %v497_v34 = vrot.slane %v496_v32, 4 }
  0x5c   : > { %v491_v36 = vadd.f32 %v490_v33, %v489_v31  ;;  %v498_v37 = vadd.f32 %v497_v34, %v496_v32 }
  0x5e   : > { %v492_v38 = vrot.slane %v491_v36, 2  ;;  %v499_v39 = vrot.slane %v498_v37, 2 }
  0x60   : > { %v493_v40 = vadd.f32 %v492_v38, %v491_v36  ;;  %v500_v41 = vadd.f32 %v499_v39, %v498_v37  ;;  %v1127_v39 = vmov 0.0  }
  0x61   : > { %446 = vst.msk [vmem:[%s424_s9] sm:$0xf] %vm445_vm10, %v1127_v39 }
  0x62   : > { %v494_v42 = vrot.slane %v493_v40, 1  ;;  %v501_v43 = vrot.slane %v500_v41, 1  ;;  %447 = vst.msk [vmem:[%s1302_s19] sm:$0xf] %vm445_vm10, %v1127_v39 }
  0x63   : > { %448 = vst.msk [vmem:[%s1307_s17] sm:$0xf] %vm445_vm10, %v1127_v39 }
  0x64   : > { %v495_v44 = vadd.f32 %v494_v42, %v493_v40  ;;  %v502_v45 = vadd.f32 %v501_v43, %v500_v41  ;;  %449 = vst.msk [vmem:[%s1312_s30] sm:$0xf] %vm445_vm10, %v1127_v39 }
  0x65   : > { %450 = vst.msk [vmem:[%s440_s1] sm:$0xf] %vm445_vm10, %v1127_v39 }
  0x66   : > { %973 = vrcp.f32 %v495_v44  ;;  %vm508_vm2 = vweird.f32 %v495_v44  ;;  %v512_v50 = vand.u32 2147483647, %v495_v44  ;;  %v514_v51 = vand.u32 2147483648, %v495_v44 }
  0x67   : > { %975 = vrcp.f32 %v502_v45  ;;  %vm522_vm3 = vweird.f32 %v502_v45  ;;  %v526_v55 = vand.u32 2147483647, %v502_v45  ;;  %v528_v56 = vand.u32 2147483648, %v502_v45 }
  0x68   : > { %977 = vlog2.f32 %v495_v44  ;;  %v515_v1 = vor.u32 1.1754944e-38, %v514_v51  ;;  %vm513_vm8 = vcmp.eq.f32.partialorder %v512_v50, 8.507059e+37 }
  0x69   : > { %979 = vlog2.f32 %v502_v45  ;;  %v529_v2 = vor.u32 1.1754944e-38, %v528_v56  ;;  %vm527_vm9 = vcmp.eq.f32.partialorder %v526_v55, 8.507059e+37 }
  0x6a   : > { %v618_v50 = vld [vmem:[%s1307_s17] sm:$0xf] }
  0x6b   : > { %v622_v51 = vld [vmem:[%s1312_s30] sm:$0xf] }
  0x6c   : > { %v974_v46 = vpop.eup %973 }
  0x6d   : > { %v976_v47 = vpop.eup %975  ;;  %v504_v48 = vmul.f32 %v974_v46, %v495_v44  ;;  %vm509_vm4 = vweird.f32 %v974_v46 }
  0x6e   : > { %v978_v49 = vpop.eup %977  ;;  %v518_v52 = vmul.f32 %v976_v47, %v502_v45  ;;  %vm523_vm5 = vweird.f32 %v976_v47  ;;  %vm1274_vm6 = vmor %vm508_vm2, %vm509_vm4  ;;  %v610_v45 = vld [vmem:[%s424_s9] sm:$0xf] }
  0x6f   : > { %v980_v53 = vpop.eup %979  ;;  %v505_v54 = vsub.f32 1.0, %v504_v48  ;;  %v538_v58 = vmul.f32 0.6931472, %v978_v49  ;;  %vm524_vm7 = vmor %vm522_vm3, %vm523_vm5  ;;  %v614_v49 = vld [vmem:[%s1302_s19] sm:$0xf] }
  0x70   : > { %v519_v57 = vsub.f32 1.0, %v518_v52  ;;  %v540_v59 = vmul.f32 0.6931472, %v980_v53 }
  0x71   : > { %v506_v60 = vmul.f32 %v974_v46, %v505_v54 }
  0x72   : > { %v520_v62 = vmul.f32 %v976_v47, %v519_v57  ;;  %v543_v63 = vrot.slane %v540_v59, 4 }
  0x73   : > { %v507_v0 = vadd.f32 %v974_v46, %v506_v60 }
  0x74   : > { %v521_v4 = vadd.f32 %v976_v47, %v520_v62  ;;  %v544_v5 = vsel %vm460_vm1, %v538_v58, %v543_v63 }
  0x75   : > { %v511_v6 = vsel %vm1274_vm6, %v974_v46, %v507_v0  ;;  %v546_v7 = vsub.f32 %v1264_v25, %v544_v5 }
  0x76   : > { %v525_v8 = vsel %vm524_vm7, %v976_v47, %v521_v4  ;;  %v516_v9 = vsel %vm513_vm8, %v515_v1, %v511_v6  ;;  %v629_v47 = vld [vmem:[%s440_s1] sm:$0xf] }
  0x77   : > { %v530_v10 = vsel %vm527_vm9, %v529_v2, %v525_v8  ;;  %v589_v12 = vsub.f32 0.0, %v546_v7 }
  0x78   : > { %v533_v13 = vrot.slane %v530_v10, 4 }
  0x79   : > { %v590_v14 = vmul.f32 %v589_v12, %v553_v11 }
  0x7a   : > { %v534_v15 = vsel %vm460_vm1, %v516_v9, %v533_v13 }
  0x7b   : > { %v536_v16 = vmul.f32 %v1267_v27, %v534_v15 }
  0x7d   : > { %v555_v17 = vmul.f32 %v553_v11, %v536_v16  ;;  %v554_v20 = vmul.f32 %v551_v35, %v536_v16 }
  0x7f   : > { %557 = vst [vmem:[#allocation1] ss:$2 sm:$0xff] %v555_v17 }
  0x86   : > { %v558_v18 = vld.sshfl [vmem:[#allocation1] sm:$0xff pattern:$0x75316420]  ;;  %v559_v19 = vld.sshfl [vmem:[#allocation1 + $0x8] sm:$0xff pattern:$0x75316420] }
  0x87   : > { %568 = vst [vmem:[#allocation1] ss:$2 sm:$0xff] %v553_v11  ;;  %v562_v31 = vsel %vm460_vm1, %v558_v18, 0.0  ;;  %v563_v32 = vsel %vm460_vm1, %v559_v19, 0.0 }
  0x88   : > { %v564_v33 = vadd.f32 %v563_v32, %v562_v31 }
  0x8e   : > { %v569_v21 = vld.sshfl [vmem:[#allocation1] sm:$0xff pattern:$0x75316420]  ;;  %v570_v22 = vld.sshfl [vmem:[#allocation1 + $0x8] sm:$0xff pattern:$0x75316420] }
  0x8f   : > { %v573_v23 = vsel %vm460_vm1, %v569_v21, 0.0  ;;  %v574_v24 = vsel %vm460_vm1, %v570_v22, 0.0  ;;  %579 = vst [vmem:[#allocation1] ss:$2 sm:$0xff] %v554_v20 }
  0x90   : > { %v575_v25 = vadd.f32 %v574_v24, %v573_v23 }
  0x92   : > { %576 = vadd.xlane.f32.xlu0 %v575_v25 }
  0x96   : > { %v580_v26 = vld.sshfl [vmem:[#allocation1] sm:$0xff pattern:$0x75316420]  ;;  %v581_v28 = vld.sshfl [vmem:[#allocation1 + $0x8] sm:$0xff pattern:$0x75316420] }
  0x97   : > { %v584_v27 = vsel %vm460_vm1, %v580_v26, 0.0  ;;  %v585_v29 = vsel %vm460_vm1, %v581_v28, 0.0  ;;  %592 = vst [vmem:[#allocation1] ss:$2 sm:$0xff] %v590_v14 }
  0x98   : > { %v586_v30 = vadd.f32 %v585_v29, %v584_v27 }
  0x9a   : > { %587 = vadd.xlane.f32.xlu1 %v586_v30 }
  0x9e   : > { %v593_v34 = vld.sshfl [vmem:[#allocation1] sm:$0xff pattern:$0x75316420]  ;;  %v594_v35 = vld.sshfl [vmem:[#allocation1 + $0x8] sm:$0xff pattern:$0x75316420] }
  0x9f   : > { %v597_v36 = vsel %vm460_vm1, %v593_v34, 0.0  ;;  %v598_v37 = vsel %vm460_vm1, %v594_v35, 0.0 }
  0xa0   : > { %v599_v38 = vadd.f32 %v598_v37, %v597_v36 }
  0xa2   : > { %565 = vadd.xlane.f32.xlu1 %v564_v33  ;;  %600 = vadd.xlane.f32.xlu2 %v599_v38 }
  0xa8   : > { %v609_v40 = vpop.xlane.xlu0 %608 }
  0xa9   : > { %v623_v41 = vperm.slane %v609_v40, 0 }
 0x105   : > { %v577_v42 = vpop.xlane.xlu0 %576 }
 0x106   : > { %v624_v44 = vsub.f32 %v623_v41, %v577_v42 }
 0x10d   : > { %v588_v43 = vpop.xlane.xlu1 %587 }
 0x10e   : > { %v625_v46 = vsub.f32 %v624_v44, %v588_v43 }
 0x115   : > { %v566_v48 = vpop.xlane.xlu1 %565  ;;  %v601_v52 = vpop.xlane.xlu2 %600 }
 0x116   : > { %v611_v53 = vadd.f32 %v610_v45, %v566_v48  ;;  %v615_v54 = vsub.f32 %v577_v42, %v566_v48  ;;  %v619_v55 = vsub.f32 %v588_v43, %v566_v48  ;;  %v626_v56 = vadd.f32 %v625_v46, %v566_v48 }
 0x117   : > { %v630_v57 = vadd.f32 %v629_v47, %v601_v52 }
 0x118   : > { %613 = vst.msk [vmem:[%s424_s9] sm:$0xf] %vm445_vm10, %v611_v53  ;;  %v616_v58 = vadd.f32 %v615_v54, %v614_v49  ;;  %v620_v59 = vadd.f32 %v619_v55, %v618_v50  ;;  %v627_v60 = vadd.f32 %v626_v56, %v622_v51 }
 0x119   : > { %631 = vst.msk [vmem:[%s440_s1] sm:$0xf] %vm445_vm10, %v630_v57 }
 0x11a   : > { %617 = vst.msk [vmem:[%s1302_s19] sm:$0xf] %vm445_vm10, %v616_v58 }
 0x11b   : > { %621 = vst.msk [vmem:[%s1307_s17] sm:$0xf] %vm445_vm10, %v620_v59 }
 0x11c   : > { %628 = vst.msk [vmem:[%s1312_s30] sm:$0xf] %vm445_vm10, %v627_v60 }
 0x11d PF: > { %s24_s29 = sadd.s32 1, %s1125_s29   ;;  %s1380_s26 = sld [smem:[#allocation9_spill]] }
 0x11e   : > { %p21_p0 = scmp.ge.s32.totalorder %s24_s29, 4   ;;  %s1381_s12 = sld [smem:[#allocation11_spill]] }
 0x11f   : > { %s1382_s6 = sld [smem:[#allocation10_spill]]  ;;  %s1383_s24 = smov %s1109_s25 }
 0x120   : > { %s1386_s27 = smov %s1121_s28 }
 0x121   :  { %23 = sbr.rel (!%p21_p0) target bundleno = 10 (0xa), region = 148 }
 0x123   : > { %s1384_s25 = smov %s1380_s26 }
 0x124   : > { %s1385_s26 = smov %s1381_s12 }
 0x125   : > { %s1387_s28 = smov %s1382_s6 }
 0x126   :  { %707 = vsyncpa [#allocation3], 1 }
 0x127   :  { %709 = vsyncpa [#allocation3 + $0x1], 1 }
 0x128   :  { %710 = vsyncpa [#allocation5], 1 }
 0x129   :  { %712 = vsyncpa [#allocation5 + $0x1], 1 }

</bundles_post_ra>
